<compile_context>
chip_gen: v6e
topology: v6e:2x2x1
jax: 0.10.0
libtpu: 0.0.40
codegen_flags: <defaults>
</compile_context>

<pallas_src>
import functools

import numpy as np
import jax
import jax.numpy as jnp
from jax.experimental import pallas as pl
from jax.experimental.pallas import tpu as pltpu


# ---------------------------------------------------------------------------
# Parameter construction (same math as the PyTorch make_kernel)
# ---------------------------------------------------------------------------
def make_kernel(k):
    k = np.asarray(k, dtype=np.float32)
    if k.ndim == 1:
        k = k[None, :] * k[:, None]
    k = k / k.sum()
    return k


# ---------------------------------------------------------------------------
# Small helpers
# ---------------------------------------------------------------------------
def _round_up(x, m):
    return (x + m - 1) // m * m


def _sublane_multiple(dtype):
    # f32 -> 8 rows / tile, bf16 -> 16, int8 -> 32 (packing is along sublanes).
    return max(8, 32 // np.dtype(dtype).itemsize)


def _vmem_budget_and_limit():
    """Per-step footprint budget + scoped-VMEM limit, per TPU generation."""
    try:
        cap = int(pltpu.get_tpu_info().vmem_capacity_bytes)
        if cap <= 0:
            raise ValueError("bad vmem capacity")
    except Exception:
        cap = 64 * 1024 * 1024        # conservative fallback (v7x per-core VMEM)
    budget = (cap * 3) // 8            # ~24 MiB on v7x, ~48 MiB on v5e/v6e
    limit = (cap * 3) // 4             # ~48 MiB on v7x, ~96 MiB on v5e/v6e
    return budget, limit, cap


# ---------------------------------------------------------------------------
# Kernel bodies
# ---------------------------------------------------------------------------
def _zero_halo_and_fill(xpad_ref, x32, p0, h, w, channels_last):
    """Zero ONLY the halo of the padded f32 slab, then write the interior."""
    if channels_last:
        hp, wp, blk = xpad_ref.shape
    else:
        blk, hp, wp = xpad_ref.shape
    p1h = hp - p0 - h
    p1w = wp - p0 - w
    if channels_last:
        if p0 > 0:
            xpad_ref[0:p0, :, :] = jnp.zeros((p0, wp, blk), jnp.float32)
            xpad_ref[p0:p0 + h, 0:p0, :] = jnp.zeros((h, p0, blk), jnp.float32)
        if p1h > 0:
            xpad_ref[p0 + h:hp, :, :] = jnp.zeros((p1h, wp, blk), jnp.float32)
        if p1w > 0:
            xpad_ref[p0:p0 + h, p0 + w:wp, :] = jnp.zeros((h, p1w, blk), jnp.float32)
        xpad_ref[p0:p0 + h, p0:p0 + w, :] = x32
    else:
        if p0 > 0:
            xpad_ref[:, 0:p0, :] = jnp.zeros((blk, p0, wp), jnp.float32)
            xpad_ref[:, p0:p0 + h, 0:p0] = jnp.zeros((blk, h, p0), jnp.float32)
        if p1h > 0:
            xpad_ref[:, p0 + h:hp, :] = jnp.zeros((blk, p1h, wp), jnp.float32)
        if p1w > 0:
            xpad_ref[:, p0:p0 + h, p0 + w:wp] = jnp.zeros((blk, h, p1w), jnp.float32)
        xpad_ref[:, p0:p0 + h, p0:p0 + w] = x32


def _blur_sep_kernel(x_ref, o_ref, xpad_ref, tmp_ref, *,
                     taps_y, taps_x, p0, h, w, oh, ow, channels_last):
    """Separable FIR: vertical pass then horizontal pass (f32 accumulation)."""
    kh, kw = len(taps_y), len(taps_x)
    _zero_halo_and_fill(xpad_ref, x_ref[...].astype(jnp.float32),
                        p0, h, w, channels_last)
    if channels_last:
        # Blocks (H, W, NC): vertical shifts on the leading (untiled) axis,
        # horizontal shifts on sublanes; lanes (NC) stay dense end-to-end.
        tmp = xpad_ref[0:oh, :, :] * taps_y[0]
        for ky in range(1, kh):
            tmp = tmp + xpad_ref[ky:ky + oh, :, :] * taps_y[ky]
        tmp_ref[...] = tmp
        acc = tmp_ref[:, 0:ow, :] * taps_x[0]
        for kx in range(1, kw):
            acc = acc + tmp_ref[:, kx:kx + ow, :] * taps_x[kx]
    else:
        # Blocks (NC, H, W): vertical shifts on sublanes, horizontal on lanes.
        tmp = xpad_ref[:, 0:oh, :] * taps_y[0]
        for ky in range(1, kh):
            tmp = tmp + xpad_ref[:, ky:ky + oh, :] * taps_y[ky]
        tmp_ref[...] = tmp
        acc = tmp_ref[:, :, 0:ow] * taps_x[0]
        for kx in range(1, kw):
            acc = acc + tmp_ref[:, :, kx:kx + ow] * taps_x[kx]
    o_ref[...] = acc.astype(o_ref.dtype)


def _blur_2d_kernel(x_ref, o_ref, xpad_ref, *,
                    taps, p0, h, w, oh, ow, channels_last):
    """General (possibly non-separable) 2-D FIR tap loop (f32 accumulation)."""
    kh, kw = len(taps), len(taps[0])
    _zero_halo_and_fill(xpad_ref, x_ref[...].astype(jnp.float32),
                        p0, h, w, channels_last)
    acc = None
    for ky in range(kh):
        for kx in range(kw):
            t = taps[ky][kx]
            if t == 0.0:
                continue
            if channels_last:
                term = xpad_ref[ky:ky + oh, kx:kx + ow, :] * t
            else:
                term = xpad_ref[:, ky:ky + oh, kx:kx + ow] * t
            acc = term if acc is None else acc + term
    if acc is None:
        acc = jnp.zeros(o_ref.shape, jnp.float32)
    o_ref[...] = acc.astype(o_ref.dtype)


# ---------------------------------------------------------------------------
# Wrapper: upfirdn2d with up=1, down=1 (the only configuration Blur uses)
# ---------------------------------------------------------------------------
def upfirdn2d_blur(x, pad, *, taps_2d=None, taps_y=None, taps_x=None,
                   block_channels=None):
    n, c, h, w = x.shape
    pad0, pad1 = pad
    separable = taps_2d is None
    if separable:
        kh, kw = len(taps_y), len(taps_x)
    else:
        kh, kw = len(taps_2d), len(taps_2d[0])

    # Negative pads == crop the input (rare; typical blur pads are >= 0).
    c0, c1 = max(-pad0, 0), max(-pad1, 0)
    if c0 or c1:
        x = x[:, :, c0:h - c1, c0:w - c1]
        h, w = x.shape[2], x.shape[3]
    p0, p1 = max(pad0, 0), max(pad1, 0)

    hp, wp = h + p0 + p1, w + p0 + p1
    oh, ow = hp - kh + 1, wp - kw + 1
    assert oh > 0 and ow > 0, "blur output would be empty"

    nc = n * c
    dtype = x.dtype
    itemsize = np.dtype(dtype).itemsize
    sub = _sublane_multiple(dtype)
    budget, vmem_limit, vmem_cap = _vmem_budget_and_limit()

    # Lane-dense layout selection: when W is lane-sparse (< 128) and NC is a
    # multiple of the 128-lane tile, put channels on the lane axis.
    channels_last = (w < 128) and (nc % 128 == 0)

    # ---- per-grid-step VMEM footprint, using (sublane, 128) tile padding ----
    def footprint(blk):
        if channels_last:
            lanes = _round_up(blk, 128)
            inb = h * _round_up(w, sub) * lanes * itemsize
            outb = oh * _round_up(ow, sub) * lanes * itemsize
            xpadb = hp * _round_up(wp, 8) * lanes * 4
            tmpb = oh * _round_up(wp, 8) * lanes * 4 if separable else 0
        else:
            inb = blk * _round_up(h, sub) * _round_up(w, 128) * itemsize
            outb = blk * _round_up(oh, sub) * _round_up(ow, 128) * itemsize
            xpadb = blk * _round_up(hp, 8) * _round_up(wp, 128) * 4
            tmpb = blk * _round_up(oh, 8) * _round_up(wp, 128) * 4 if separable else 0
        # in/out blocks are double-buffered by the pipeline; scratch is not.
        return 2 * (inb + outb) + xpadb + tmpb

    # ---- block-size selection ----------------------------------------------
    if channels_last:
        # blk must be a multiple of 128 (lane tile) that divides nc.
        step_cap = nc
        if nc // 4 >= 128:
            step_cap = nc // 4          # >= 4 grid steps for megacore/pipelining
        elif nc // 2 >= 128:
            step_cap = nc // 2
        blk = 128
        for cand in range(128, step_cap + 1, 128):
            if nc % cand == 0 and footprint(cand) <= budget:
                blk = cand
        # NOTE: block_channels is only honoured on the channels-leading path.
    else:
        per_ch = footprint(1)
        blk = max(1, min(nc, budget // max(per_ch, 1)))
        if nc >= 4:
            blk = min(blk, max(1, nc // 4))   # >= 4 grid steps when nc permits
        if block_channels is not None:
            blk = max(1, min(blk, int(block_channels)))
        while nc % blk != 0:                  # never pad/slice the NC axis in HBM
            blk -= 1
    grid = (nc // blk,)

    # Scoped VMEM limit: cover the chosen footprint with headroom, never above
    # physical capacity.  TODO(synk): halo'd spatial tiling for images whose
    # single-plane footprint exceeds VMEM.
    vmem_limit = min(max(vmem_limit, footprint(blk) + (2 << 20)), vmem_cap)

    # ---- specs / kernel ------------------------------------------------------
    if channels_last:
        xf = jnp.transpose(x.reshape(nc, h, w), (1, 2, 0))        # (H, W, NC)
        in_spec = pl.BlockSpec((h, w, blk), lambda i: (0, 0, i))
        out_spec = pl.BlockSpec((oh, ow, blk), lambda i: (0, 0, i))
        out_shape = jax.ShapeDtypeStruct((oh, ow, nc), dtype)
        xpad_shape, tmp_shape = (hp, wp, blk), (oh, wp, blk)
    else:
        xf = x.reshape(nc, h, w)                                   # free reshape
        in_spec = pl.BlockSpec((blk, h, w), lambda i: (i, 0, 0))
        out_spec = pl.BlockSpec((blk, oh, ow), lambda i: (i, 0, 0))
        out_shape = jax.ShapeDtypeStruct((nc, oh, ow), dtype)
        xpad_shape, tmp_shape = (blk, hp, wp), (blk, oh, wp)

    if separable:
        kern = functools.partial(_blur_sep_kernel, taps_y=taps_y, taps_x=taps_x,
                                 p0=p0, h=h, w=w, oh=oh, ow=ow,
                                 channels_last=channels_last)
        scratch = [pltpu.VMEM(xpad_shape, jnp.float32),
                   pltpu.VMEM(tmp_shape, jnp.float32)]
    else:
        kern = functools.partial(_blur_2d_kernel, taps=taps_2d,
                                 p0=p0, h=h, w=w, oh=oh, ow=ow,
                                 channels_last=channels_last)
        scratch = [pltpu.VMEM(xpad_shape, jnp.float32)]

    out = pl.pallas_call(
        kern,
        out_shape=out_shape,
        grid_spec=pltpu.PrefetchScalarGridSpec(
            num_scalar_prefetch=0,
            grid=grid,
            in_specs=[in_spec],
            out_specs=out_spec,
            scratch_shapes=scratch,
        ),
        compiler_params=pltpu.CompilerParams(
            dimension_semantics=("parallel",),
            vmem_limit_bytes=int(vmem_limit),
        ),
    )(xf)

    if channels_last:
        out = jnp.transpose(out, (2, 0, 1))
    return out.reshape(n, c, oh, ow)


# ---------------------------------------------------------------------------
# Blur module equivalent (forward only)
# ---------------------------------------------------------------------------
class Blur:
    def __init__(self, kernel, pad, upsample_factor=1):
        k_in = np.asarray(kernel, dtype=np.float32)
        self.separable = (k_in.ndim == 1)

        k2 = make_kernel(kernel)
        if upsample_factor > 1:
            k2 = k2 * (upsample_factor ** 2)
        self.kernel = jnp.asarray(k2, dtype=jnp.float32)   # buffer equivalent
        self.pad = tuple(pad)

        # Flipped FIR taps as static Python floats (baked into the kernel).
        kflip = np.ascontiguousarray(k2[::-1, ::-1])
        self.taps_2d = tuple(tuple(float(v) for v in row) for row in kflip)
        self.taps_y = None
        self.taps_x = None
        if self.separable:
            s = float(k_in.sum())
            up2 = float(upsample_factor ** 2) if upsample_factor > 1 else 1.0
            k_rev = k_in[::-1]
            self.taps_y = tuple(float(v) / s * up2 for v in k_rev)
            self.taps_x = tuple(float(v) / s for v in k_rev)

    def __call__(self, x):
        # TODO(synk): backward pass (UpFirDn2dBackward autograd) not implemented.
        if self.separable:
            return upfirdn2d_blur(x, self.pad,
                                  taps_y=self.taps_y, taps_x=self.taps_x)
        return upfirdn2d_blur(x, self.pad, taps_2d=self.taps_2d)


# ---------------------------------------------------------------------------
# Pure-JAX reference (mirrors upfirdn2d_native with up=down=1, pads >= 0)
# ---------------------------------------------------------------------------
def _ref_blur(x, k2d, pad):
    n, c, h, w = x.shape
    p0, p1 = pad
    kh, kw = k2d.shape
    xp = jnp.pad(x, ((0, 0), (0, 0), (p0, p1), (p0, p1)))
    kf = jnp.flip(k2d, (0, 1))
    oh = h + p0 + p1 - kh + 1
    ow = w + p0 + p1 - kw + 1
    out = jnp.zeros((n, c, oh, ow), jnp.float32)
    for ky in range(kh):
        for kx in range(kw):
            out = out + xp[:, :, ky:ky + oh, kx:kx + ow].astype(jnp.float32) * kf[ky, kx]
    return out.astype(x.dtype)


if __name__ == "__main__":
    key = jax.random.PRNGKey(0)
    ka, kb, kc, kd, ke = jax.random.split(key, 5)

    # 1) standard StyleGAN2 blur: separable [1,3,3,1], pad=(2,1), NC < 128
    x = jax.random.normal(ka, (2, 4, 16, 16), dtype=jnp.float32)
    blur = Blur(kernel=[1, 3, 3, 1], pad=(2, 1), upsample_factor=1)
    out = jax.block_until_ready(blur(x))
    ref = _ref_blur(x, blur.kernel, blur.pad)
    assert out.shape == (2, 4, 16, 16), out.shape
    assert jnp.allclose(out, ref, atol=1e-5, rtol=1e-5), "separable blur mismatch"

    # 2) asymmetric separable taps + upsample scaling, non-square spatial
    x2 = jax.random.normal(kb, (2, 3, 20, 24), dtype=jnp.float32)
    blur2 = Blur(kernel=[1.0, 2.0, 3.0, 4.0], pad=(2, 1), upsample_factor=2)
    out2 = jax.block_until_ready(blur2(x2))
    ref2 = _ref_blur(x2, blur2.kernel, blur2.pad)
    assert jnp.allclose(out2, ref2, atol=1e-5, rtol=1e-5), "upsample blur mismatch"

    # 3) non-separable 2-D FIR (asymmetric, with a zero tap)
    x3 = jax.random.normal(kc, (1, 5, 16, 16), dtype=jnp.float32)
    blur3 = Blur(kernel=[[1.0, 2.0, 0.0], [2.0, 4.0, 1.0], [1.0, 2.0, 3.0]],
                 pad=(1, 1))
    out3 = jax.block_until_ready(blur3(x3))
    ref3 = _ref_blur(x3, blur3.kernel, blur3.pad)
    assert jnp.allclose(out3, ref3, atol=1e-5, rtol=1e-5), "2d blur mismatch"

    # 4a) lane-dense channels-last path (W < 128, NC % 128 == 0), separable
    x4 = jax.random.normal(kd, (2, 64, 16, 16), dtype=jnp.float32)
    out4 = jax.block_until_ready(blur(x4))
    ref4 = _ref_blur(x4, blur.kernel, blur.pad)
    assert jnp.allclose(out4, ref4, atol=1e-5, rtol=1e-5), "channels-last sep mismatch"

    # 4b) lane-dense channels-last path, non-separable 2-D FIR
    x5 = jax.random.normal(ke, (1, 128, 12, 12), dtype=jnp.float32)
    out5 = jax.block_until_ready(blur3(x5))
    ref5 = _ref_blur(x5, blur3.kernel, blur3.pad)
    assert jnp.allclose(out5, ref5, atol=1e-5, rtol=1e-5), "channels-last 2d mismatch"

    # 5) force a smaller block / multi-step grid on the channels-leading path
    out6 = upfirdn2d_blur(x, blur.pad, taps_y=blur.taps_y, taps_x=blur.taps_x,
                          block_channels=2)
    out6 = jax.block_until_ready(out6)
    assert jnp.allclose(out6, ref, atol=1e-5, rtol=1e-5), "multi-block blur mismatch"

    # 6) bf16 input (exercises the 16-row sublane tile-padded footprint maths)
    xb = x.astype(jnp.bfloat16)
    outb = jax.block_until_ready(blur(xb))
    refb = _ref_blur(xb, blur.kernel, blur.pad)
    assert jnp.allclose(outb.astype(jnp.float32), refb.astype(jnp.float32),
                        atol=3e-2, rtol=3e-2), "bf16 blur mismatch"

    print("KERNEL_OK")
</pallas_src>

<mosaic_0001>
module attributes {stable_mosaic.version = 11 : i64} {
  func.func @_blur_sep_kernel(%arg0: i32, %arg1: memref<2x16x16xf32, #tpu.memory_space<vmem>>, %arg2: memref<2x16x16xf32, #tpu.memory_space<vmem>>, %arg3: memref<2x19x19xf32, #tpu.memory_space<vmem>>, %arg4: memref<2x16x19xf32, #tpu.memory_space<vmem>>) attributes {dimension_semantics = [#tpu.dimension_semantics<parallel>], iteration_bounds = array<i64: 4>, scalar_prefetch = 0 : i64, scratch_operands = 2 : i64, tpu.core_type = #tpu.core_type<tc>, window_params = [{transform_indices = @transform_0, window_bounds = array<i64: 2, 16, 16>}, {transform_indices = @transform_1, window_bounds = array<i64: 2, 16, 16>}]} {
    %c0 = arith.constant 0 : index
    %c0_0 = arith.constant 0 : index
    %c0_1 = arith.constant 0 : index
    %0 = vector.load %arg1[%c0, %c0_0, %c0_1] : memref<2x16x16xf32, #tpu.memory_space<vmem>>, vector<2x16x16xf32>
    %cst = arith.constant 0.000000e+00 : f32
    %1 = vector.broadcast %cst : f32 to vector<2x2x19xf32>
    %c0_2 = arith.constant 0 : index
    %c0_3 = arith.constant 0 : index
    %c0_4 = arith.constant 0 : index
    %2 = vector.load %arg3[%c0_2, %c0_3, %c0_4] : memref<2x19x19xf32, #tpu.memory_space<vmem>>, vector<2x2x19xf32>
    tpu.vector_store %arg3[%c0_2, %c0_3, %c0_4], %1 {strides = array<i32>} : memref<2x19x19xf32, #tpu.memory_space<vmem>>, vector<2x2x19xf32>,
    %cst_5 = arith.constant 0.000000e+00 : f32
    %3 = vector.broadcast %cst_5 : f32 to vector<2x16x2xf32>
    %c0_6 = arith.constant 0 : index
    %c2 = arith.constant 2 : index
    %c0_7 = arith.constant 0 : index
    %4 = vector.load %arg3[%c0_6, %c2, %c0_7] : memref<2x19x19xf32, #tpu.memory_space<vmem>>, vector<2x16x2xf32>
    tpu.vector_store %arg3[%c0_6, %c2, %c0_7], %3 {strides = array<i32>} : memref<2x19x19xf32, #tpu.memory_space<vmem>>, vector<2x16x2xf32>,
    %cst_8 = arith.constant 0.000000e+00 : f32
    %5 = vector.broadcast %cst_8 : f32 to vector<2x1x19xf32>
    %c0_9 = arith.constant 0 : index
    %c18 = arith.constant 18 : index
    %c0_10 = arith.constant 0 : index
    %6 = vector.load %arg3[%c0_9, %c18, %c0_10] : memref<2x19x19xf32, #tpu.memory_space<vmem>>, vector<2x1x19xf32>
    tpu.vector_store %arg3[%c0_9, %c18, %c0_10], %5 {strides = array<i32>} : memref<2x19x19xf32, #tpu.memory_space<vmem>>, vector<2x1x19xf32>,
    %cst_11 = arith.constant 0.000000e+00 : f32
    %7 = vector.broadcast %cst_11 : f32 to vector<2x16x1xf32>
    %c0_12 = arith.constant 0 : index
    %c2_13 = arith.constant 2 : index
    %c18_14 = arith.constant 18 : index
    %8 = vector.load %arg3[%c0_12, %c2_13, %c18_14] : memref<2x19x19xf32, #tpu.memory_space<vmem>>, vector<2x16x1xf32>
    tpu.vector_store %arg3[%c0_12, %c2_13, %c18_14], %7 {strides = array<i32>} : memref<2x19x19xf32, #tpu.memory_space<vmem>>, vector<2x16x1xf32>,
    %c0_15 = arith.constant 0 : index
    %c2_16 = arith.constant 2 : index
    %c2_17 = arith.constant 2 : index
    %9 = vector.load %arg3[%c0_15, %c2_16, %c2_17] : memref<2x19x19xf32, #tpu.memory_space<vmem>>, vector<2x16x16xf32>
    tpu.vector_store %arg3[%c0_15, %c2_16, %c2_17], %0 {strides = array<i32>} : memref<2x19x19xf32, #tpu.memory_space<vmem>>, vector<2x16x16xf32>,
    %c0_18 = arith.constant 0 : index
    %c0_19 = arith.constant 0 : index
    %c0_20 = arith.constant 0 : index
    %10 = vector.load %arg3[%c0_18, %c0_19, %c0_20] : memref<2x19x19xf32, #tpu.memory_space<vmem>>, vector<2x16x19xf32>
    %cst_21 = arith.constant 1.250000e-01 : f32
    %11 = vector.broadcast %cst_21 : f32 to vector<2x16x19xf32>
    %12 = arith.mulf %10, %11 : vector<2x16x19xf32>
    %c0_22 = arith.constant 0 : index
    %c1 = arith.constant 1 : index
    %c0_23 = arith.constant 0 : index
    %13 = vector.load %arg3[%c0_22, %c1, %c0_23] : memref<2x19x19xf32, #tpu.memory_space<vmem>>, vector<2x16x19xf32>
    %cst_24 = arith.constant 3.750000e-01 : f32
    %14 = vector.broadcast %cst_24 : f32 to vector<2x16x19xf32>
    %15 = arith.mulf %13, %14 : vector<2x16x19xf32>
    %16 = arith.addf %12, %15 : vector<2x16x19xf32>
    %c0_25 = arith.constant 0 : index
    %c2_26 = arith.constant 2 : index
    %c0_27 = arith.constant 0 : index
    %17 = vector.load %arg3[%c0_25, %c2_26, %c0_27] : memref<2x19x19xf32, #tpu.memory_space<vmem>>, vector<2x16x19xf32>
    %cst_28 = arith.constant 3.750000e-01 : f32
    %18 = vector.broadcast %cst_28 : f32 to vector<2x16x19xf32>
    %19 = arith.mulf %17, %18 : vector<2x16x19xf32>
    %20 = arith.addf %16, %19 : vector<2x16x19xf32>
    %c0_29 = arith.constant 0 : index
    %c3 = arith.constant 3 : index
    %c0_30 = arith.constant 0 : index
    %21 = vector.load %arg3[%c0_29, %c3, %c0_30] : memref<2x19x19xf32, #tpu.memory_space<vmem>>, vector<2x16x19xf32>
    %cst_31 = arith.constant 1.250000e-01 : f32
    %22 = vector.broadcast %cst_31 : f32 to vector<2x16x19xf32>
    %23 = arith.mulf %21, %22 : vector<2x16x19xf32>
    %24 = arith.addf %20, %23 : vector<2x16x19xf32>
    %c0_32 = arith.constant 0 : index
    %c0_33 = arith.constant 0 : index
    %c0_34 = arith.constant 0 : index
    %25 = vector.load %arg4[%c0_32, %c0_33, %c0_34] : memref<2x16x19xf32, #tpu.memory_space<vmem>>, vector<2x16x19xf32>
    tpu.vector_store %arg4[%c0_32, %c0_33, %c0_34], %24 {strides = array<i32>} : memref<2x16x19xf32, #tpu.memory_space<vmem>>, vector<2x16x19xf32>,
    %c0_35 = arith.constant 0 : index
    %c0_36 = arith.constant 0 : index
    %c0_37 = arith.constant 0 : index
    %26 = vector.load %arg4[%c0_35, %c0_36, %c0_37] : memref<2x16x19xf32, #tpu.memory_space<vmem>>, vector<2x16x16xf32>
    %cst_38 = arith.constant 1.250000e-01 : f32
    %27 = vector.broadcast %cst_38 : f32 to vector<2x16x16xf32>
    %28 = arith.mulf %26, %27 : vector<2x16x16xf32>
    %c0_39 = arith.constant 0 : index
    %c0_40 = arith.constant 0 : index
    %c1_41 = arith.constant 1 : index
    %29 = vector.load %arg4[%c0_39, %c0_40, %c1_41] : memref<2x16x19xf32, #tpu.memory_space<vmem>>, vector<2x16x16xf32>
    %cst_42 = arith.constant 3.750000e-01 : f32
    %30 = vector.broadcast %cst_42 : f32 to vector<2x16x16xf32>
    %31 = arith.mulf %29, %30 : vector<2x16x16xf32>
    %32 = arith.addf %28, %31 : vector<2x16x16xf32>
    %c0_43 = arith.constant 0 : index
    %c0_44 = arith.constant 0 : index
    %c2_45 = arith.constant 2 : index
    %33 = vector.load %arg4[%c0_43, %c0_44, %c2_45] : memref<2x16x19xf32, #tpu.memory_space<vmem>>, vector<2x16x16xf32>
    %cst_46 = arith.constant 3.750000e-01 : f32
    %34 = vector.broadcast %cst_46 : f32 to vector<2x16x16xf32>
    %35 = arith.mulf %33, %34 : vector<2x16x16xf32>
    %36 = arith.addf %32, %35 : vector<2x16x16xf32>
    %c0_47 = arith.constant 0 : index
    %c0_48 = arith.constant 0 : index
    %c3_49 = arith.constant 3 : index
    %37 = vector.load %arg4[%c0_47, %c0_48, %c3_49] : memref<2x16x19xf32, #tpu.memory_space<vmem>>, vector<2x16x16xf32>
    %cst_50 = arith.constant 1.250000e-01 : f32
    %38 = vector.broadcast %cst_50 : f32 to vector<2x16x16xf32>
    %39 = arith.mulf %37, %38 : vector<2x16x16xf32>
    %40 = arith.addf %36, %39 : vector<2x16x16xf32>
    %c0_51 = arith.constant 0 : index
    %c0_52 = arith.constant 0 : index
    %c0_53 = arith.constant 0 : index
    %41 = vector.load %arg2[%c0_51, %c0_52, %c0_53] : memref<2x16x16xf32, #tpu.memory_space<vmem>>, vector<2x16x16xf32>
    tpu.vector_store %arg2[%c0_51, %c0_52, %c0_53], %40 {strides = array<i32>} : memref<2x16x16xf32, #tpu.memory_space<vmem>>, vector<2x16x16xf32>,
    return
  }
  func.func @transform_0(%arg0: i32) -> (i32, i32, i32) {
    %c0_i32 = arith.constant 0 : i32
    %c0_i32_0 = arith.constant 0 : i32
    %c0_i32_1 = arith.constant 0 : i32
    return %arg0, %c0_i32, %c0_i32_0 : i32, i32, i32
  }
  func.func @transform_1(%arg0: i32) -> (i32, i32, i32) {
    %c0_i32 = arith.constant 0 : i32
    %c0_i32_0 = arith.constant 0 : i32
    %c0_i32_1 = arith.constant 0 : i32
    return %arg0, %c0_i32, %c0_i32_0 : i32, i32, i32
  }
}

</mosaic_0001>

<bundles_post_ra>
// kernel: tpu_custom_call.1
= control target key start
LH: loop header
LB: loop body
LE: loop exit
PB: predicated region body
PF: predicated region fallthrough
CT: control target
= control target key end

     0   :  { %6 = vsyncpa [#allocation5], 0  ;;  %s743_s0 = inlined_call_operand.hbm [shape: f32[8,16,16], index: 0, kind: input, shape index: {}]   ;;  %s744_s1 = inlined_call_operand.hbm [shape: f32[8,16,16], index: 1, kind: output, shape index: {}]  }
   0x1   :  { %8 = vsyncpa [#allocation5 + $0x1], 0 }
   0x2   :  { %9 = vsyncpa [#allocation6], 0 }
   0x3   :  { %11 = vsyncpa [#allocation6 + $0x1], 0  ;;  %s579_s6 = smov 0   ;;  %s581_s7 = smov 0  }
   0x4   :  { %s583_s8 = smov 0   ;;  %s585_s9 = smov 0  }
   0x5 LB: > { %s600_s10 = sadd.s32 4294967295, %s556_s9   ;;  %s389_s11 = sadd.s32 4294967294, %s556_s9   ;;  %s556_s9 = sphi %s585_s9, %s758_s9   ;;  %s552_s8 = sphi %s583_s8, %s757_s8   ;;  %s548_s7 = sphi %s581_s7, %s756_s7   ;;  %s544_s6 = sphi %s579_s6, %s755_s6  }
   0x6   : > { %s604_s12 = sadd.s32 1, %s556_s9   ;;  %s24_s13 = sadd.s32 1, %s552_s8 }
   0x7   : > { %s21_s14 = ssub.s32 %s556_s9, %s604_s12  ;;  %p31_p0 = scmp.ne.s32.totalorder %s552_s8, %s548_s7 }
   0x8   : > { %p22_p1 = scmp.eq.s32.totalorder %s21_s14, 0  ;;  %p32_p2 = scmp.eq.s32.totalorder %s556_s9, 0 }
   0x9   : > { %p37_p3 = scmp.ne.s32.totalorder %s548_s7, %s544_s6  ;;  %p38_p4 = scmp.eq.s32.totalorder %s600_s10, 0 }
   0xa   : > { %s616_s15 = scalar_select %p22_p1, %s552_s8, %s24_s13  }
   0xb   : > { %p618_p5 = por %p32_p2, %p31_p0  ;;  %p622_p6 = por %p38_p4, %p37_p3 }
   0xc   : > { %p61_p7 = scmp.eq.s32.totalorder %s600_s10, 3  ;;  %p67_p8 = scmp.eq.s32.totalorder %s389_s11, 3 }
   0xd   : > { %s748_s17 = scalar_select %p622_p6, 1, 0 }
   0xe   : > { %p421_p9 = scmp.lt.s32.totalorder %s556_s9, 4  ;;  %p628_p10 = por %p61_p7, %p31_p0 }
   0xf   : > { %p632_p11 = por %p67_p8, %p37_p3  ;;  %s87_s20 = sand.u32 1, %s552_s8  }
  0x10   : > { %s749_s18 = scalar_select %p628_p10, 1, 0 }
  0x11   : > { %s750_s19 = scalar_select %p632_p11, 1, 0 }
  0x12   : > { %s406_s21 = sshll.u32 %s556_s9, 9  ;;  %s392_s22 = sshll.u32 %s87_s20, 5 }
  0x13   : > { %s641_s25 = scalar_lea.hbm %s743_s0, %s406_s21  ;;  %s91_s26 = scalar_lea.vmem [#allocation4], %s392_s22 }
  0x14   : > { %s99_s27 = sshll.u32 %s91_s26, 4  ;;  %p645_p12 = pnand %p421_p9, %p618_p5  ;;  %s649_s27 = int_to_ptr.vmem [resolvable:$true] %s99_s27 }
  0x15   : > { %s651_s29 = scalar_lea.sflag [#allocation5], %s87_s20  ;;  %s464_s30 = scalar_lea.hbm %s641_s25, 512 }
  0x16   : > { %p465_p13 = scmp.ne.s32.totalorder %s641_s25, %s464_s30  ;;  %p466_p0 = pneg %p645_p12 }
  0x17   : > { %s469_s4 = scalar_lea.hbm %s743_s0, 2048  ;;  %p470_p3 = scmp.lt.s32.totalorder %s641_s25, %s743_s0 }
  0x18   : > { %p467_p1 = pnand %p466_p0, %p465_p13  ;;  %p471_p4 = scmp.lt.s32.totalorder %s469_s4, %s464_s30 }
  0x1a   : > { %p468_p2 = pneg %p467_p1  ;;  %p472_p5 = por %p471_p4, %p470_p3 }
  0x1c   : > { %p473_p7 = pnand %p472_p5, %p468_p2 }
  0x1e   : > { %476 = shalt.err (!%p473_p7)
}
  0x1f   : > { %s477_s13 = scalar_lea.vmem %s649_s27, 512  ;;  %s558_s14 = smov [#allocation4]  }
  0x20   : > { %p478_p8 = scmp.ne.s32.totalorder %s649_s27, %s477_s13  ;;  %s482_s16 = sshll.u32 %s558_s14, 4  ;;  %s483_s16 = int_to_ptr.vmem [resolvable:$false] %s482_s16 }
  0x21   : > { %s484_s20 = scalar_lea.vmem %s483_s16, 1024  ;;  %p485_p1 = scmp.lt.s32.totalorder %s649_s27, %s483_s16 }
  0x22   : > { %p480_p9 = pnand %p478_p8, %p466_p0  ;;  %p486_p11 = scmp.lt.s32.totalorder %s484_s20, %s477_s13 }
  0x24   : > { %p481_p13 = pneg %p480_p9  ;;  %p487_p10 = por %p486_p11, %p485_p1 }
  0x26   : > { %p488_p6 = pnand %p487_p10, %p481_p13 }
  0x28   : > { %491 = shalt.err (!%p488_p6)
}
  0x29   : > { %s559_s21 = smov 128   ;;  %s560_s22 = smov 8  }
  0x2a   : > { %416 = dma.hbm_to_vmem [thread:$0]  (!%p645_p12), %s641_s25, 512, %s649_s27, %s651_s29, %s559_s21, %s559_s21, %s560_s22  }
  0x2b   : > { %p396_p0 = scmp.ge.s32.totalorder %s556_s9, 1  ;;  %p107_p2 = scmp.lt.s32.totalorder %s556_s9, 5 }
  0x2d   : > { %p108_p3 = pnand %p396_p0, %p107_p2 }
  0x2e   : > { %s675_s23 = sand.u32 (!%p108_p3), 1, %s548_s7   ;;  %p752_p6 = scmp.ne.s32.totalorder (!%p108_p3), %s748_s17, 0 }
  0x2f   : > { %111 = sbr.rel (%p108_p3) target bundleno = 353 (0x161), region = 24  ;;  %s397_s24 = sshll.u32 (!%p108_p3), %s675_s23, 5 }
  0x30   : > { %s114_s26 = scalar_lea.sflag (!%p108_p3), [#allocation5], %s675_s23  ;;  %s117_s30 = scalar_lea.vmem (!%p108_p3), [#allocation4], %s397_s24 }
  0x34   : > { %535 = dma.done.wait (%p752_p6), %s114_s26, 512  }
  0x35   : > { %537 = vsyncadd (%p752_p6), %s114_s26, 4294966784  ;;  %vm142_vm0 = vcmask 148480   ;;  %vm145_vm1 = vcmask 15360   ;;  %vm153_vm2 = vcmask 154768   ;;  %v561_v0 = vmov 0.0   ;;  %v140_v1 = vld [vmem:[%s117_s30 + $0x10] sm:$0xff] }
  0x36   : > { %144 = vst.msk [vmem:[#allocation2 + $0x18] sm:$0x3] %vm142_vm0, %v561_v0  ;;  %143 = vst.msk [vmem:[#allocation2] sm:$0x3] %vm142_vm0, %v561_v0  ;;  %vm150_vm3 = vcmask 147456   ;;  %v138_v2 = vld [vmem:[%s117_s30] sm:$0xff] }
  0x37   : > { %148 = vst.msk [vmem:[#allocation2 + $0x1a] sm:$0xff] %vm145_vm1, %v561_v0  ;;  %146 = vst.msk [vmem:[#allocation2 + $0x2] sm:$0xff] %vm145_vm1, %v561_v0  ;;  %s562_s17 = smov 2   ;;  %v141_v3 = vld [vmem:[%s117_s30 + $0x18] sm:$0xff]  ;;  %v139_v4 = vld [vmem:[%s117_s30 + $0x8] sm:$0xff]  ;;  %vm174_vm4 = vcmask 146448  }
  0x38   : > { %147 = vst.msk [vmem:[#allocation2 + $0xa] sm:$0xff] %vm145_vm1, %v561_v0  ;;  %149 = vst.msk [vmem:[#allocation2 + $0x22] sm:$0xff] %vm145_vm1, %v561_v0  ;;  %166 = vrot.lane.b32.xlu1 %v140_v1, %s562_s17  ;;  %162 = vrot.lane.b32.xlu0 %v138_v2, %s562_s17  ;;  %vm223_vm5 = vcmask 154624   ;;  %s563_s25 = smov 127   ;;  %s564_s27 = smov 126   ;;  %vm296_vm6 = vcmask 130048  }
  0x39   : > { %156 = vst.msk [vmem:[#allocation2 + $0x1a] sm:$0xff] %vm153_vm2, %v561_v0  ;;  %154 = vst.msk [vmem:[#allocation2 + $0x2] sm:$0xff] %vm153_vm2, %v561_v0  ;;  %s565_s28 = smov 125   ;;  %s135_s29 = scalar_lea.vmem [#allocation7], %s397_s24 }
  0x3a   : > { %155 = vst.msk [vmem:[#allocation2 + $0xa] sm:$0xff] %vm153_vm2, %v561_v0  ;;  %157 = vst.msk [vmem:[#allocation2 + $0x22] sm:$0xff] %vm153_vm2, %v561_v0  ;;  %s316_s2 = sshll.u32 %s135_s29, 4  ;;  %s408_s3 = sshll.u32 %s600_s10, 9  ;;  %s693_s2 = int_to_ptr.vmem [resolvable:$true] %s316_s2 }
  0x3b   : > { %152 = vst.msk [vmem:[#allocation2 + $0x2a] sm:$0x1] %vm150_vm3, %v561_v0  ;;  %151 = vst.msk [vmem:[#allocation2 + $0x12] sm:$0x1] %vm150_vm3, %v561_v0  ;;  %s700_s11 = scalar_lea.hbm %s744_s1, %s408_s3  ;;  %s302_s10 = scalar_lea.sflag [#allocation6], %s675_s23 }
  0x3c   : > { %168 = vrot.lane.b32.xlu1 %v141_v3, %s562_s17  ;;  %164 = vrot.lane.b32.xlu0 %v139_v4, %s562_s17  ;;  %s492_s13 = scalar_lea.vmem %s693_s2, 512  ;;  %p753_p11 = scmp.ne.s32.totalorder %s749_s18, 0 }
  0x3d   : > { %p493_p10 = scmp.ne.s32.totalorder %s693_s2, %s492_s13  ;;  %s566_s14 = smov [#allocation7]  }
  0x3e   : > { %s496_s16 = sshll.u32 %s566_s14, 4  ;;  %s497_s16 = int_to_ptr.vmem [resolvable:$false] %s496_s16 }
  0x3f   : > { %p494_p12 = pnand %p493_p10, %p753_p11  ;;  %s498_s20 = scalar_lea.vmem %s497_s16, 1024 }
  0x40   : > { %p499_p5 = scmp.lt.s32.totalorder %s693_s2, %s497_s16  ;;  %p500_p7 = scmp.lt.s32.totalorder %s498_s20, %s492_s13 }
  0x41   : > { %p495_p4 = pneg %p494_p12 }
  0x42   : > { %p501_p8 = por %p500_p7, %p499_p5 }
  0x44   : > { %p502_p9 = pnand %p501_p8, %p495_p4 }
  0xaa   : > { %v167_v5 = vpop.permute.xlu1 %166  ;;  %v163_v6 = vpop.permute.xlu0 %162 }
  0xab   : > { %177 = vst.msk [vmem:[#allocation2 + $0x1a] sm:$0xff] %vm174_vm4, %v167_v5  ;;  %175 = vst.msk [vmem:[#allocation2 + $0x2] sm:$0xff] %vm174_vm4, %v163_v6 }
  0xae   : > { %v169_v7 = vpop.permute.xlu1 %168  ;;  %v165_v8 = vpop.permute.xlu0 %164 }
  0xaf   : > { %178 = vst.msk [vmem:[#allocation2 + $0x22] sm:$0xff] %vm174_vm4, %v169_v7  ;;  %176 = vst.msk [vmem:[#allocation2 + $0xa] sm:$0xff] %vm174_vm4, %v165_v8 }
  0xb2   : > { %v181_v9 = vld [vmem:[#allocation2 + $0x18] sm:$0xff]  ;;  %v179_v15 = vld [vmem:[#allocation2] sm:$0xff] }
  0xb3   : > { %v189_v10 = vld [vmem:[#allocation2 + $0x19] sm:$0xff]  ;;  %v185_v12 = vmul.f32 0.125, %v181_v9  ;;  %v187_v16 = vld [vmem:[#allocation2 + $0x1] sm:$0xff]  ;;  %v183_v18 = vmul.f32 0.125, %v179_v15 }
  0xb4   : > { %v201_v11 = vld [vmem:[#allocation2 + $0x1a] sm:$0xff]  ;;  %v193_v13 = vmul.f32 0.375, %v189_v10  ;;  %v199_v17 = vld [vmem:[#allocation2 + $0x2] sm:$0xff]  ;;  %v191_v19 = vmul.f32 0.375, %v187_v16 }
  0xb5   : > { %v205_v14 = vmul.f32 0.375, %v201_v11  ;;  %v203_v22 = vmul.f32 0.375, %v199_v17 }
  0xb6   : > { %v197_v20 = vadd.f32 %v193_v13, %v185_v12  ;;  %v195_v21 = vadd.f32 %v191_v19, %v183_v18  ;;  %v182_v23 = vld [vmem:[#allocation2 + $0x20] sm:$0xff]  ;;  %v180_v32 = vld [vmem:[#allocation2 + $0x8] sm:$0xff] }
  0xb7   : > { %v190_v24 = vld [vmem:[#allocation2 + $0x21] sm:$0xff]  ;;  %v186_v27 = vmul.f32 0.125, %v182_v23  ;;  %v184_v35 = vmul.f32 0.125, %v180_v32  ;;  %v188_v36 = vld [vmem:[#allocation2 + $0x9] sm:$0xff] }
  0xb8   : > { %v202_v25 = vld [vmem:[#allocation2 + $0x22] sm:$0xff]  ;;  %v209_v26 = vadd.f32 %v205_v14, %v197_v20  ;;  %v194_v28 = vmul.f32 0.375, %v190_v24  ;;  %v207_v33 = vadd.f32 %v203_v22, %v195_v21  ;;  %v200_v37 = vld [vmem:[#allocation2 + $0xa] sm:$0xff]  ;;  %v192_v41 = vmul.f32 0.375, %v188_v36 }
  0xb9   : > { %v206_v29 = vmul.f32 0.375, %v202_v25  ;;  %v213_v30 = vld [vmem:[#allocation2 + $0x1b] sm:$0xff]  ;;  %v214_v31 = vld [vmem:[#allocation2 + $0x23] sm:$0xff]  ;;  %v212_v44 = vld [vmem:[#allocation2 + $0xb] sm:$0xff]  ;;  %v204_v47 = vmul.f32 0.375, %v200_v37 }
  0xba   : > { %v217_v34 = vmul.f32 0.125, %v213_v30  ;;  %v211_v38 = vld [vmem:[#allocation2 + $0x3] sm:$0xff]  ;;  %v198_v39 = vadd.f32 %v194_v28, %v186_v27  ;;  %v218_v40 = vmul.f32 0.125, %v214_v31  ;;  %v196_v46 = vadd.f32 %v192_v41, %v184_v35 }
  0xbb   : > { %v215_v42 = vmul.f32 0.125, %v211_v38  ;;  %v216_v51 = vmul.f32 0.125, %v212_v44 }
  0xbc   : > { %v221_v43 = vadd.f32 %v217_v34, %v209_v26  ;;  %v210_v45 = vadd.f32 %v206_v29, %v198_v39  ;;  %v208_v50 = vadd.f32 %v204_v47, %v196_v46 }
  0xbd   : > { %v219_v48 = vadd.f32 %v215_v42, %v207_v33 }
  0xbe   : > { %226 = vst.msk [vmem:[#allocation3 + $0x10] sm:$0xff] %vm223_vm5, %v221_v43  ;;  %v222_v49 = vadd.f32 %v218_v40, %v210_v45  ;;  %v220_v52 = vadd.f32 %v216_v51, %v208_v50 }
  0xbf   : > { %224 = vst.msk [vmem:[#allocation3] sm:$0xff] %vm223_vm5, %v219_v48 }
  0xc0   : > { %227 = vst.msk [vmem:[#allocation3 + $0x18] sm:$0xff] %vm223_vm5, %v222_v49  ;;  %225 = vst.msk [vmem:[#allocation3 + $0x8] sm:$0xff] %vm223_vm5, %v220_v52 }
  0xc5   : > { %v230_v55 = vld [vmem:[#allocation3 + $0x10] sm:$0xff] }
  0xc6   : > { %v228_v53 = vld [vmem:[#allocation3] sm:$0xff]  ;;  %v238_v57 = vmul.f32 0.375, %v230_v55  ;;  %v234_v62 = vmul.f32 0.125, %v230_v55 }
  0xc7   : > { %v236_v54 = vmul.f32 0.375, %v228_v53  ;;  %v229_v56 = vld [vmem:[#allocation3 + $0x8] sm:$0xff]  ;;  %v231_v59 = vld [vmem:[#allocation3 + $0x18] sm:$0xff]  ;;  %v232_v61 = vmul.f32 0.125, %v228_v53 }
  0xc8   : > { %v237_v58 = vmul.f32 0.375, %v229_v56  ;;  %v239_v60 = vmul.f32 0.375, %v231_v59  ;;  %v233_v63 = vmul.f32 0.125, %v229_v56  ;;  %v235_v0 = vmul.f32 0.125, %v231_v59 }
  0xc9   : > { %244 = vrot.lane.b32.xlu0 %v236_v54, %s563_s25 }
  0xca   : > { %246 = vrot.lane.b32.xlu1 %v237_v58, %s563_s25 }
  0xcd   : > { %248 = vrot.lane.b32.xlu0 %v238_v57, %s563_s25 }
  0xce   : > { %250 = vrot.lane.b32.xlu1 %v239_v60, %s563_s25 }
  0xd1   : > { %260 = vrot.lane.b32.xlu0 %v236_v54, %s564_s27 }
  0xd2   : > { %262 = vrot.lane.b32.xlu1 %v237_v58, %s564_s27 }
  0xd5   : > { %264 = vrot.lane.b32.xlu0 %v238_v57, %s564_s27 }
  0xd6   : > { %266 = vrot.lane.b32.xlu1 %v239_v60, %s564_s27 }
  0xd9   : > { %280 = vrot.lane.b32.xlu0 %v232_v61, %s565_s28 }
  0xda   : > { %282 = vrot.lane.b32.xlu1 %v233_v63, %s565_s28 }
  0xdd   : > { %284 = vrot.lane.b32.xlu0 %v234_v62, %s565_s28 }
  0xde   : > { %286 = vrot.lane.b32.xlu1 %v235_v0, %s565_s28 }
 0x13b   : > { %v245_v1 = vpop.permute.xlu0 %244 }
 0x13c   : > { %v247_v3 = vpop.permute.xlu1 %246  ;;  %v256_v8 = vadd.f32 %v245_v1, %v232_v61 }
 0x13d   : > { %v257_v13 = vadd.f32 %v247_v3, %v233_v63 }
 0x13f   : > { %v249_v2 = vpop.permute.xlu0 %248 }
 0x140   : > { %v251_v5 = vpop.permute.xlu1 %250  ;;  %v258_v12 = vadd.f32 %v249_v2, %v234_v62 }
 0x141   : > { %v259_v19 = vadd.f32 %v251_v5, %v235_v0 }
 0x143   : > { %v261_v4 = vpop.permute.xlu0 %260 }
 0x144   : > { %v263_v7 = vpop.permute.xlu1 %262  ;;  %v272_v9 = vadd.f32 %v261_v4, %v256_v8 }
 0x145   : > { %v273_v16 = vadd.f32 %v263_v7, %v257_v13 }
 0x147   : > { %v265_v6 = vpop.permute.xlu0 %264 }
 0x148   : > { %v267_v11 = vpop.permute.xlu1 %266  ;;  %v274_v15 = vadd.f32 %v265_v6, %v258_v12 }
 0x149   : > { %v275_v22 = vadd.f32 %v267_v11, %v259_v19 }
 0x14b   : > { %v281_v10 = vpop.permute.xlu0 %280 }
 0x14c   : > { %v292_v14 = vadd.f32 %v281_v10, %v272_v9  ;;  %v283_v18 = vpop.permute.xlu1 %282 }
 0x14d   : > { %v293_v21 = vadd.f32 %v283_v18, %v273_v16 }
 0x14e   : > { %297 = vst.msk [vmem:[%s135_s29] sm:$0xff] %vm296_vm6, %v292_v14 }
 0x14f   : > { %v285_v17 = vpop.permute.xlu0 %284  ;;  %298 = vst.msk [vmem:[%s135_s29 + $0x8] sm:$0xff] %vm296_vm6, %v293_v21 }
 0x150   : > { %v294_v20 = vadd.f32 %v285_v17, %v274_v15  ;;  %v287_v23 = vpop.permute.xlu1 %286 }
 0x151   : > { %v295_v24 = vadd.f32 %v287_v23, %v275_v22 }
 0x152   : > { %299 = vst.msk [vmem:[%s135_s29 + $0x10] sm:$0xff] %vm296_vm6, %v294_v20 }
 0x153   : > { %300 = vst.msk [vmem:[%s135_s29 + $0x18] sm:$0xff] %vm296_vm6, %v295_v24 }
 0x154   : > { %505 = shalt.err (!%p502_p9)
}
 0x155   : > { %s506_s21 = scalar_lea.hbm %s700_s11, 512  ;;  %s510_s26 = scalar_lea.hbm %s744_s1, 2048 }
 0x156   : > { %p507_p13 = scmp.ne.s32.totalorder %s700_s11, %s506_s21  ;;  %p511_p2 = scmp.lt.s32.totalorder %s700_s11, %s744_s1 }
 0x157   : > { %p512_p3 = scmp.lt.s32.totalorder %s510_s26, %s506_s21 }
 0x158   : > { %p508_p1 = pnand %p507_p13, %p753_p11 }
 0x159   : > { %p513_p6 = por %p512_p3, %p511_p2 }
 0x15a   : > { %p509_p0 = pneg %p508_p1 }
 0x15c   : > { %p514_p10 = pnand %p513_p6, %p509_p0 }
 0x15e   : > { %517 = shalt.err (!%p514_p10)
}
 0x15f   : > { %s567_s25 = smov 128   ;;  %s568_s27 = smov 8  }
 0x160   : > { %411 = dma.vmem_to_hbm [thread:$0]  (%p753_p11), %s693_s2, 512, %s700_s11, %s302_s10, %s567_s25, %s567_s25, %s568_s27  }
 0x161 PF: > { %p422_p12 = scmp.ge.s32.totalorder %s556_s9, 2  ;;  %s331_s28 = sand.u32 1, %s544_s6  }
 0x162   : > { %p754_p4 = scmp.ne.s32.totalorder %s750_s19, 0  ;;  %s332_s29 = scalar_lea.sflag [#allocation6], %s331_s28 }
 0x164   : > { %p418_p5 = pnand %p422_p12, %p754_p4 }
 0x166   : > { %p419_p7 = pneg %p418_p5 }
 0x168   : > { %539 = dma.done.wait (%p419_p7), %s332_s29, 512  }
 0x169   : > { %541 = vsyncadd (%p419_p7), %s332_s29, 4294966784  ;;  %p14_p8 = scmp.ge.s32.totalorder %s604_s12, 6   ;;  %s755_s6 = smov %s548_s7 }
 0x16a   : > { %s756_s7 = smov %s552_s8  ;;  %s757_s8 = smov %s616_s15 }
 0x16b   : > { %s758_s9 = smov %s604_s12  ;;  %16 = sbr.rel (!%p14_p8) target bundleno = 5 (0x5), region = 69 }
 0x170   :  { %337 = vsyncpa [#allocation5], 1 }
 0x171   :  { %339 = vsyncpa [#allocation5 + $0x1], 1 }
 0x172   :  { %340 = vsyncpa [#allocation6], 1 }
 0x173   :  { %342 = vsyncpa [#allocation6 + $0x1], 1 }

</bundles_post_ra>
